<compile_context>
chip_gen: v7x
topology: tpu7x:2x2x1
jax: 0.10.0
libtpu: 0.0.40
codegen_flags: <defaults>
</compile_context>

<pallas_src>
import jax
import jax.numpy as jnp
from jax import lax
from jax.experimental import pallas as pl
from jax.experimental.pallas import tpu as pltpu


# ----------------------------------------------------------------------------
# Fused single-step Pallas kernel:
#   conv-matmul -> ReLU -> global-avg-pool (pool-matrix matmul)
#   -> backbone fc -> feature Linear -> L2 normalize.
# ----------------------------------------------------------------------------
def _fused_kernel(p_ref, wc_ref, bc_ref, pool_ref, wb_ref, bb_ref,
                  wf_ref, bf_ref, o_ref):
    # p_ref   : [R, K]       im2col patch matrix (bf16)
    # wc_ref  : [K, OC]      conv weight, pre-transposed (bf16)
    # bc_ref  : [1, OC]      f32
    # pool_ref: [B_pad, R]   pooling matrix (inv_pool one-hot rows, f32)
    # wb_ref  : [OC, E]      backbone fc weight, pre-transposed (f32)
    # bb_ref  : [1, E]
    # wf_ref  : [E, D]       self.feature weight, pre-transposed (f32)
    # bf_ref  : [1, D]
    # o_ref   : [B_pad, D]   lane-dense output block

    # Conv as matmul (bf16 operands, f32 accumulation), bias + ReLU in f32.
    conv = jnp.dot(p_ref[...], wc_ref[...],
                   preferred_element_type=jnp.float32)          # [R, OC]
    conv = jnp.maximum(conv + bc_ref[...], 0.0)

    # Global average pool as an MXU matmul: [B_pad, R] @ [R, OC] -> [B_pad, OC].
    # Padded batch rows of pool_ref are all-zero -> zero features (sliced off
    # in the wrapper; the eps in the normalize keeps them finite).
    feats = jnp.dot(pool_ref[...], conv,
                    preferred_element_type=jnp.float32)         # [B_pad, OC]

    # Backbone fc -> feature Linear.
    h = jnp.dot(feats, wb_ref[...],
                preferred_element_type=jnp.float32) + bb_ref[...]   # [B_pad, E]
    y = jnp.dot(h, wf_ref[...],
                preferred_element_type=jnp.float32) + bf_ref[...]   # [B_pad, D]

    # F.normalize(y, p=2, dim=1, eps=1e-12):
    #   y / max(||y||, eps) == y * rsqrt(max(sum(y*y), eps^2))
    ss = jnp.sum(y * y, axis=1, keepdims=True)
    inv = lax.rsqrt(jnp.maximum(ss, 1e-24))
    o_ref[...] = y * inv


# ----------------------------------------------------------------------------
# Glue: im2col (plain JAX, no hot compute)
# TODO(synk): at real 224x224 / 64-channel scale this 9x-blowup im2col must
# move inside the kernel as shifted matmuls (implicit im2col).
# ----------------------------------------------------------------------------
def im2col_3x3_same(img):
    # img: [B, C, H, W] -> patches [B*H*W, C*9]  (C-major, then kh, kw)
    B, C, H, W = img.shape
    xp = jnp.pad(img, ((0, 0), (0, 0), (1, 1), (1, 1)))
    cols = []
    for dh in range(3):
        for dw in range(3):
            cols.append(xp[:, :, dh:dh + H, dw:dw + W])          # [B, C, H, W]
    patches = jnp.stack(cols, axis=2)                            # [B, C, 9, H, W]
    patches = patches.transpose(0, 3, 4, 1, 2)                   # [B, H, W, C, 9]
    return patches.reshape(B * H * W, C * 9)


# ----------------------------------------------------------------------------
# Forward wrapper
# ----------------------------------------------------------------------------
def sop_resnet18_embedding_forward(img, params):
    B, C, H, W = img.shape
    hw = H * W
    R = B * hw

    # im2col in f32, then cast the MXU operands (patches, conv weight) to
    # bf16; all post-matmul math stays f32.
    patches = im2col_3x3_same(img).astype(jnp.bfloat16)          # [R, K]
    K = patches.shape[1]

    # Pre-transpose weights once (wrapper-side, tiny) so kernel dots need no
    # in-kernel transpose.
    wc_t = params["wc"].T.astype(jnp.bfloat16)                   # [K, OC]
    wb_t = params["wb"].T                                        # [OC, E]
    wf_t = params["wf"].T                                        # [E, D]
    bc, bb, bf = params["bc"], params["bb"], params["bf"]
    OC, E, D = wc_t.shape[1], wb_t.shape[1], wf_t.shape[1]

    # Pad the batch/sublane axis up to a full 8-sublane tile.
    B_pad = max(8, ((B + 7) // 8) * 8)

    # Pooling matrix: pool[b, r] = 1/(H*W) iff row r belongs to image b.
    # Rows b >= B are all-zero (padded batch -> zero pooled features).
    row_owner = jnp.arange(R, dtype=jnp.int32) // hw             # [R]
    img_ids = jnp.arange(B_pad, dtype=jnp.int32)                 # [B_pad]
    pool = (img_ids[:, None] == row_owner[None, :]).astype(jnp.float32) / hw

    # Advisory cost estimate (helps XLA schedule the im2col producer).
    flops = (2 * R * K * OC          # conv matmul
             + 2 * B_pad * R * OC    # pool matmul
             + 2 * B_pad * OC * E    # backbone fc
             + 2 * B_pad * E * D)    # feature Linear
    bytes_accessed = (R * K * 2 + K * OC * 2          # bf16 patches + conv W
                      + B_pad * R * 4                 # pool matrix
                      + OC * E * 4 + E * D * 4        # f32 weights
                      + (OC + E + D) * 4              # biases
                      + B_pad * D * 4)                # output
    cost = pl.CostEstimate(flops=flops, transcendentals=B_pad,
                           bytes_accessed=bytes_accessed)

    out = pl.pallas_call(
        _fused_kernel,
        out_shape=jax.ShapeDtypeStruct((B_pad, D), jnp.float32),
        grid=(1,),                                    # single step, single DMA set
        in_specs=[
            pl.BlockSpec((R, K), lambda i: (0, 0)),       # patch matrix (full)
            pl.BlockSpec((K, OC), lambda i: (0, 0)),      # conv weight
            pl.BlockSpec((1, OC), lambda i: (0, 0)),
            pl.BlockSpec((B_pad, R), lambda i: (0, 0)),   # pooling matrix
            pl.BlockSpec((OC, E), lambda i: (0, 0)),      # backbone fc
            pl.BlockSpec((1, E), lambda i: (0, 0)),
            pl.BlockSpec((E, D), lambda i: (0, 0)),       # feature Linear
            pl.BlockSpec((1, D), lambda i: (0, 0)),
        ],
        # Lane-dense resident output block: [8, 128].
        out_specs=pl.BlockSpec((B_pad, D), lambda i: (0, 0)),
        compiler_params=pltpu.CompilerParams(
            dimension_semantics=("arbitrary",),
            vmem_limit_bytes=32 * 1024 * 1024,
        ),
        cost_estimate=cost,
    )(patches, wc_t, bc, pool, wb_t, bb, wf_t, bf)
    return out[:B]


# ----------------------------------------------------------------------------
# Deterministic parameter init (mimics PyTorch defaults / kaiming_uniform)
# ----------------------------------------------------------------------------
def make_params(key, in_ch=3, conv_ch=8, backbone_out=64, feature_dim=128):
    ks = jax.random.split(key, 6)
    k_conv = in_ch * 9
    u = lambda k, shape, bound: jax.random.uniform(
        k, shape, jnp.float32, -bound, bound)
    # conv (PyTorch default: U(-1/sqrt(fan_in), 1/sqrt(fan_in)))
    wc = u(ks[0], (conv_ch, k_conv), 1.0 / jnp.sqrt(k_conv))
    bc = u(ks[1], (1, conv_ch), 1.0 / jnp.sqrt(k_conv))
    # backbone fc (stand-in for resnet18.fc)
    wb = u(ks[2], (backbone_out, conv_ch), 1.0 / jnp.sqrt(conv_ch))
    bb = u(ks[3], (1, backbone_out), 1.0 / jnp.sqrt(conv_ch))
    # self.feature: kaiming_uniform_(mode='fan_in', nonlinearity='relu')
    # bound = gain * sqrt(3/fan_in), gain = sqrt(2)  =>  sqrt(6/fan_in)
    wf = u(ks[4], (feature_dim, backbone_out), jnp.sqrt(6.0 / backbone_out))
    bf = u(ks[5], (1, feature_dim), 1.0 / jnp.sqrt(backbone_out))
    return dict(wc=wc, bc=bc, wb=wb, bb=bb, wf=wf, bf=bf)


# ----------------------------------------------------------------------------
# Pure-JAX f32 reference (module semantics)
# ----------------------------------------------------------------------------
def _reference(img, p):
    patches = im2col_3x3_same(img)
    conv = jnp.maximum(patches @ p["wc"].T + p["bc"], 0.0)
    B, C, H, W = img.shape
    feats = jnp.mean(conv.reshape(B, H, W, -1), axis=(1, 2))
    h = feats @ p["wb"].T + p["bb"]
    y = h @ p["wf"].T + p["bf"]
    n = jnp.sqrt(jnp.sum(y * y, axis=1, keepdims=True))
    return y / jnp.maximum(n, 1e-12)


if __name__ == "__main__":
    key = jax.random.PRNGKey(0)
    k_img, k_par = jax.random.split(key)

    # Small shapes consistent with the module: NCHW image, feature_dim scaled
    # down (1000 -> 64 backbone out, 1024 -> 128 feature dim).
    B, C, H, W = 2, 3, 16, 16
    img = jax.random.normal(k_img, (B, C, H, W), jnp.float32)
    params = make_params(k_par, in_ch=C, conv_ch=8,
                         backbone_out=64, feature_dim=128)

    out = sop_resnet18_embedding_forward(img, params)
    out = jax.block_until_ready(out)

    ref = _reference(img, params)
    assert out.shape == (B, 128)
    # bf16 MXU operands (f32 accumulation) vs pure-f32 reference: ~1e-2 rel.
    assert jnp.allclose(out, ref, atol=1e-2, rtol=1e-2)
    # Output is L2-normalized along dim=1 (normalization is exact f32).
    assert jnp.allclose(jnp.linalg.norm(out, axis=1), 1.0, atol=1e-4)

    print("KERNEL_OK")
</pallas_src>

<mosaic_0001>
module attributes {stable_mosaic.version = 11 : i64} {
  func.func @_fused_kernel(%arg0: i32, %arg1: memref<512x27xbf16, #tpu.memory_space<vmem>>, %arg2: memref<27x8xbf16, #tpu.memory_space<vmem>>, %arg3: memref<1x8xf32, #tpu.memory_space<vmem>>, %arg4: memref<8x512xf32, #tpu.memory_space<vmem>>, %arg5: memref<8x64xf32, #tpu.memory_space<vmem>>, %arg6: memref<1x64xf32, #tpu.memory_space<vmem>>, %arg7: memref<64x128xf32, #tpu.memory_space<vmem>>, %arg8: memref<1x128xf32, #tpu.memory_space<vmem>>, %arg9: memref<8x128xf32, #tpu.memory_space<vmem>>) attributes {dimension_semantics = [#tpu.dimension_semantics<arbitrary>], iteration_bounds = array<i64: 1>, scalar_prefetch = 0 : i64, scratch_operands = 0 : i64, tpu.core_type = #tpu.core_type<tc>, window_params = [{pipeline_mode = #tpu.pipeline_mode<synchronous>, transform_indices = @transform_0, window_bounds = array<i64: 512, 27>}, {pipeline_mode = #tpu.pipeline_mode<synchronous>, transform_indices = @transform_1, window_bounds = array<i64: 27, 8>}, {pipeline_mode = #tpu.pipeline_mode<synchronous>, transform_indices = @transform_2, window_bounds = array<i64: 1, 8>}, {pipeline_mode = #tpu.pipeline_mode<synchronous>, transform_indices = @transform_3, window_bounds = array<i64: 8, 512>}, {pipeline_mode = #tpu.pipeline_mode<synchronous>, transform_indices = @transform_4, window_bounds = array<i64: 8, 64>}, {pipeline_mode = #tpu.pipeline_mode<synchronous>, transform_indices = @transform_5, window_bounds = array<i64: 1, 64>}, {pipeline_mode = #tpu.pipeline_mode<synchronous>, transform_indices = @transform_6, window_bounds = array<i64: 64, 128>}, {pipeline_mode = #tpu.pipeline_mode<synchronous>, transform_indices = @transform_7, window_bounds = array<i64: 1, 128>}, {pipeline_mode = #tpu.pipeline_mode<synchronous>, transform_indices = @transform_8, window_bounds = array<i64: 8, 128>}]} {
    %c0 = arith.constant 0 : index
    %c0_0 = arith.constant 0 : index
    %0 = vector.load %arg1[%c0, %c0_0] : memref<512x27xbf16, #tpu.memory_space<vmem>>, vector<512x27xbf16>
    %c0_1 = arith.constant 0 : index
    %c0_2 = arith.constant 0 : index
    %1 = vector.load %arg2[%c0_1, %c0_2] : memref<27x8xbf16, #tpu.memory_space<vmem>>, vector<27x8xbf16>
    %cst = arith.constant dense<0.000000e+00> : vector<512x8xf32>
    %2 = tpu.matmul %0, %1, %cst {dimension_numbers = #tpu.dot_dimension_numbers<[1], [0], [0], [1], [0, 0, 1, 1], [], []>} : vector<512x27xbf16>, vector<27x8xbf16>, vector<512x8xf32> -> vector<512x8xf32>
    %c0_3 = arith.constant 0 : index
    %c0_4 = arith.constant 0 : index
    %3 = vector.load %arg3[%c0_3, %c0_4] : memref<1x8xf32, #tpu.memory_space<vmem>>, vector<1x8xf32>
    %4 = vector.broadcast %3 : vector<1x8xf32> to vector<512x8xf32>
    %5 = arith.addf %2, %4 : vector<512x8xf32>
    %cst_5 = arith.constant 0.000000e+00 : f32
    %6 = vector.broadcast %cst_5 : f32 to vector<512x8xf32>
    %7 = arith.maximumf %5, %6 : vector<512x8xf32>
    %c0_6 = arith.constant 0 : index
    %c0_7 = arith.constant 0 : index
    %8 = vector.load %arg4[%c0_6, %c0_7] : memref<8x512xf32, #tpu.memory_space<vmem>>, vector<8x512xf32>
    %cst_8 = arith.constant dense<0.000000e+00> : vector<8x8xf32>
    %9 = tpu.matmul %8, %7, %cst_8 {dimension_numbers = #tpu.dot_dimension_numbers<[1], [0], [0], [1], [0, 0, 1, 1], [], []>} : vector<8x512xf32>, vector<512x8xf32>, vector<8x8xf32> -> vector<8x8xf32>
    %c0_9 = arith.constant 0 : index
    %c0_10 = arith.constant 0 : index
    %10 = vector.load %arg5[%c0_9, %c0_10] : memref<8x64xf32, #tpu.memory_space<vmem>>, vector<8x64xf32>
    %cst_11 = arith.constant dense<0.000000e+00> : vector<8x64xf32>
    %11 = tpu.matmul %9, %10, %cst_11 {dimension_numbers = #tpu.dot_dimension_numbers<[1], [0], [0], [1], [0, 0, 1, 1], [], []>} : vector<8x8xf32>, vector<8x64xf32>, vector<8x64xf32> -> vector<8x64xf32>
    %c0_12 = arith.constant 0 : index
    %c0_13 = arith.constant 0 : index
    %12 = vector.load %arg6[%c0_12, %c0_13] : memref<1x64xf32, #tpu.memory_space<vmem>>, vector<1x64xf32>
    %13 = vector.broadcast %12 : vector<1x64xf32> to vector<8x64xf32>
    %14 = arith.addf %11, %13 : vector<8x64xf32>
    %c0_14 = arith.constant 0 : index
    %c0_15 = arith.constant 0 : index
    %15 = vector.load %arg7[%c0_14, %c0_15] : memref<64x128xf32, #tpu.memory_space<vmem>>, vector<64x128xf32>
    %cst_16 = arith.constant dense<0.000000e+00> : vector<8x128xf32>
    %16 = tpu.matmul %14, %15, %cst_16 {dimension_numbers = #tpu.dot_dimension_numbers<[1], [0], [0], [1], [0, 0, 1, 1], [], []>} : vector<8x64xf32>, vector<64x128xf32>, vector<8x128xf32> -> vector<8x128xf32>
    %c0_17 = arith.constant 0 : index
    %c0_18 = arith.constant 0 : index
    %17 = vector.load %arg8[%c0_17, %c0_18] : memref<1x128xf32, #tpu.memory_space<vmem>>, vector<1x128xf32>
    %18 = vector.broadcast %17 : vector<1x128xf32> to vector<8x128xf32>
    %19 = arith.addf %16, %18 : vector<8x128xf32>
    %20 = arith.mulf %19, %19 : vector<8x128xf32>
    %cst_19 = arith.constant dense<0.000000e+00> : vector<8xf32>
    %21 = vector.multi_reduction <add>, %20, %cst_19 [1] : vector<8x128xf32> to vector<8xf32>
    %22 = vector.shape_cast %21 : vector<8xf32> to vector<8x1xf32>
    %cst_20 = arith.constant 1.000000e-24 : f32
    %23 = vector.broadcast %cst_20 : f32 to vector<8x1xf32>
    %24 = arith.maximumf %22, %23 : vector<8x1xf32>
    %25 = math.rsqrt %24 : vector<8x1xf32>
    %26 = vector.broadcast %25 : vector<8x1xf32> to vector<8x128xf32>
    %27 = arith.mulf %19, %26 : vector<8x128xf32>
    %c0_21 = arith.constant 0 : index
    %c0_22 = arith.constant 0 : index
    %28 = vector.load %arg9[%c0_21, %c0_22] : memref<8x128xf32, #tpu.memory_space<vmem>>, vector<8x128xf32>
    tpu.vector_store %arg9[%c0_21, %c0_22], %27 {strides = array<i32>} : memref<8x128xf32, #tpu.memory_space<vmem>>, vector<8x128xf32>,
    return
  }
  func.func @transform_0(%arg0: i32) -> (i32, i32) {
    %c0_i32 = arith.constant 0 : i32
    %c0_i32_0 = arith.constant 0 : i32
    %c0_i32_1 = arith.constant 0 : i32
    return %c0_i32, %c0_i32_0 : i32, i32
  }
  func.func @transform_1(%arg0: i32) -> (i32, i32) {
    %c0_i32 = arith.constant 0 : i32
    %c0_i32_0 = arith.constant 0 : i32
    %c0_i32_1 = arith.constant 0 : i32
    return %c0_i32, %c0_i32_0 : i32, i32
  }
  func.func @transform_2(%arg0: i32) -> (i32, i32) {
    %c0_i32 = arith.constant 0 : i32
    %c0_i32_0 = arith.constant 0 : i32
    %c0_i32_1 = arith.constant 0 : i32
    return %c0_i32, %c0_i32_0 : i32, i32
  }
  func.func @transform_3(%arg0: i32) -> (i32, i32) {
    %c0_i32 = arith.constant 0 : i32
    %c0_i32_0 = arith.constant 0 : i32
    %c0_i32_1 = arith.constant 0 : i32
    return %c0_i32, %c0_i32_0 : i32, i32
  }
  func.func @transform_4(%arg0: i32) -> (i32, i32) {
    %c0_i32 = arith.constant 0 : i32
    %c0_i32_0 = arith.constant 0 : i32
    %c0_i32_1 = arith.constant 0 : i32
    return %c0_i32, %c0_i32_0 : i32, i32
  }
  func.func @transform_5(%arg0: i32) -> (i32, i32) {
    %c0_i32 = arith.constant 0 : i32
    %c0_i32_0 = arith.constant 0 : i32
    %c0_i32_1 = arith.constant 0 : i32
    return %c0_i32, %c0_i32_0 : i32, i32
  }
  func.func @transform_6(%arg0: i32) -> (i32, i32) {
    %c0_i32 = arith.constant 0 : i32
    %c0_i32_0 = arith.constant 0 : i32
    %c0_i32_1 = arith.constant 0 : i32
    return %c0_i32, %c0_i32_0 : i32, i32
  }
  func.func @transform_7(%arg0: i32) -> (i32, i32) {
    %c0_i32 = arith.constant 0 : i32
    %c0_i32_0 = arith.constant 0 : i32
    %c0_i32_1 = arith.constant 0 : i32
    return %c0_i32, %c0_i32_0 : i32, i32
  }
  func.func @transform_8(%arg0: i32) -> (i32, i32) {
    %c0_i32 = arith.constant 0 : i32
    %c0_i32_0 = arith.constant 0 : i32
    %c0_i32_1 = arith.constant 0 : i32
    return %c0_i32, %c0_i32_0 : i32, i32
  }
}

</mosaic_0001>

<bundles_post_ra>
// kernel: tpu_custom_call.1
= control target key start
LH: loop header
LB: loop body
LE: loop exit
PB: predicated region body
PF: predicated region fallthrough
CT: control target
= control target key end

     0   :  { %vm374_vm0 = vcmask 1044480   ;;  %vm375_vm1 = vcmask 1045504   ;;  %v1493_v2 = vmov 65535   ;;  %vm277_vm2 = vcmask 220160   ;;  %s1853_s0 = inlined_call_operand.vmem [shape: bf16[512,27], index: 0, kind: input, shape index: {}]   ;;  %s1854_s1 = inlined_call_operand.vmem [shape: bf16[27,8], index: 1, kind: input, shape index: {}]   ;;  %s1855_s2 = inlined_call_operand.vmem [shape: f32[1,8], index: 2, kind: input, shape index: {}]   ;;  %s1856_s3 = inlined_call_operand.vmem [shape: f32[8,512], index: 3, kind: input, shape index: {}]   ;;  %s1857_s4 = inlined_call_operand.vmem [shape: f32[8,64], index: 4, kind: input, shape index: {}]   ;;  %s1858_s5 = inlined_call_operand.vmem [shape: f32[1,64], index: 5, kind: input, shape index: {}]   ;;  %s1859_s6 = inlined_call_operand.vmem [shape: f32[64,128], index: 6, kind: input, shape index: {}]   ;;  %s1860_s7 = inlined_call_operand.vmem [shape: f32[1,128], index: 7, kind: input, shape index: {}]   ;;  %s1861_s8 = inlined_call_operand.hbm [shape: f32[8,128], index: 8, kind: output, shape index: {}]  }
   0x1   :  { %v1433_v0 = vld [vmem:[%s1854_s1] sm:$0xff]   ;;  %v1434_v1 = vld [vmem:[%s1854_s1 + $0x8] sm:$0x3f]   ;;  %v376_v3 = vsel %vm374_vm0, 4294967295, %v1493_v2  ;;  %v1437_v8 = vld [vmem:[%s1853_s0 + $0x10] sm:$0xff]  }
   0x2   :  { %1256 = vmatprep.subr.bf16.mxu0 %v1433_v0  ;;  %1424 = vmatprep.subr.bf16.mxu1 %v1433_v0  ;;  %v1435_v4 = vld [vmem:[%s1853_s0] sm:$0xff]   ;;  %v377_v5 = vsel %vm375_vm1, %v376_v3, 0  ;;  %v1436_v7 = vld [vmem:[%s1853_s0 + $0x8] sm:$0xff]   ;;  %v1438_v9 = vld [vmem:[%s1853_s0 + $0x18] sm:$0xff]  }
   0x3   :  { %1257 = vmatpush3.bf16.msra.mxu0 %v1433_v0  ;;  %1426 = vmatpush3.bf16.msra.mxu1 %v1433_v0  ;;  %v379_v6 = vand.u32 %v1434_v1, %v377_v5  ;;  %v1439_v10 = vld [vmem:[%s1853_s0 + $0x20] sm:$0xff]   ;;  %v1452_v12 = vld [vmem:[%s1853_s0 + $0xc8] sm:$0xff]   ;;  %v1455_v14 = vld [vmem:[%s1853_s0 + $0xd0] sm:$0xff]  }
   0x4   :  { %1260 = vmatprep.mubr.msk.bf16.mxu0 %vm277_vm2, %v1435_v4  ;;  %v1451_v11 = vld [vmem:[%s1853_s0 + $0xc0] sm:$0xff]   ;;  %v1440_v13 = vld [vmem:[%s1853_s0 + $0x28] sm:$0xff]   ;;  %v1441_v15 = vld [vmem:[%s1853_s0 + $0x30] sm:$0xff]  }
   0x5   :  { %1258 = vmatprep.subr.bf16.mxu0 %v379_v6  ;;  %1425 = vmatprep.subr.bf16.mxu1 %v379_v6  ;;  %v1456_v16 = vld [vmem:[%s1853_s0 + $0xd8] sm:$0xff]   ;;  %v1459_v17 = vld [vmem:[%s1853_s0 + $0xe0] sm:$0xff]   ;;  %v1460_v20 = vld [vmem:[%s1853_s0 + $0xe8] sm:$0xff]  }
   0x6   :  { %1308 = vmatprep.mubr.msk.bf16.mxu1 %vm277_vm2, %v1451_v11  ;;  %v1442_v18 = vld [vmem:[%s1853_s0 + $0x38] sm:$0xff]   ;;  %v1443_v19 = vld [vmem:[%s1853_s0 + $0x40] sm:$0xff]  }
   0x7   :  { %1259 = vmatpush3.bf16.msra.mxu0 %v379_v6  ;;  %1427 = vmatpush3.bf16.msra.mxu1 %v379_v6 }
   0xa   :  { %1261 = vmatmul.mubr.msk.bf16.vlgmr.msra.gmra.mrb[0].mxu0 %vm277_vm2, %v1436_v7  ;;  %1309 = vmatmul.mubr.msk.bf16.vlgmr.msra.gmra.mrb[0].mxu1 %vm277_vm2, %v1452_v12 }
   0xb   :  { %1264 = vmatprep.mubr.msk.bf16.mxu0 %vm277_vm2, %v1437_v8  ;;  %1312 = vmatprep.mubr.msk.bf16.mxu1 %vm277_vm2, %v1455_v14 }
  0x12   :  { %1265 = vmatmul.mubr.msk.bf16.gmra.mrb[4].mxu0 %vm277_vm2, %v1438_v9  ;;  %1313 = vmatmul.mubr.msk.bf16.gmra.mrb[4].mxu1 %vm277_vm2, %v1456_v16 }
  0x13   :  { %1268 = vmatprep.mubr.msk.bf16.mxu0 %vm277_vm2, %v1439_v10  ;;  %1316 = vmatprep.mubr.msk.bf16.mxu1 %vm277_vm2, %v1459_v17 }
  0x1a   :  { %1269 = vmatmul.mubr.msk.bf16.gmra.mrb[8].mxu0 %vm277_vm2, %v1440_v13 }
  0x1b   :  { %1272 = vmatprep.mubr.msk.bf16.mxu0 %vm277_vm2, %v1441_v15 }
  0x1c   :  { %13 = vsyncpa [#allocation3], 0  ;;  %v1463_v21 = vld [vmem:[%s1853_s0 + $0xf0] sm:$0xff]   ;;  %1317 = vmatmul.mubr.msk.bf16.gmra.mrb[8].mxu1 %vm277_vm2, %v1460_v20  ;;  %v1444_v22 = vld [vmem:[%s1853_s0 + $0x48] sm:$0xff]   ;;  %vm1495_vm3 = vmmov 0   ;;  %vm886_vm4 = vcmask 64512  }
  0x1d   :  { %1320 = vmatprep.mubr.msk.bf16.mxu1 %vm277_vm2, %v1463_v21  ;;  %v1445_v23 = vld [vmem:[%s1853_s0 + $0x50] sm:$0xff]   ;;  %v1464_v24 = vld [vmem:[%s1853_s0 + $0xf8] sm:$0xff]   ;;  %v1447_v26 = vld [vmem:[%s1853_s0 + $0x60] sm:$0xff]   ;;  %vm975_vm5 = vcmask 523264  }
  0x1e   :  { %v1446_v25 = vld [vmem:[%s1853_s0 + $0x58] sm:$0xff]   ;;  %v1448_v27 = vld [vmem:[%s1853_s0 + $0x68] sm:$0xff]   ;;  %v1449_v28 = vld [vmem:[%s1853_s0 + $0x70] sm:$0xff]  }
  0x1f   :  { %v1450_v29 = vld [vmem:[%s1853_s0 + $0x78] sm:$0xff]   ;;  %v1453_v30 = vld [vmem:[%s1853_s0 + $0x80] sm:$0xff]   ;;  %v1454_v31 = vld [vmem:[%s1853_s0 + $0x88] sm:$0xff]  }
  0x20   :  { %v1457_v32 = vld [vmem:[%s1853_s0 + $0x90] sm:$0xff]   ;;  %v1458_v33 = vld [vmem:[%s1853_s0 + $0x98] sm:$0xff]   ;;  %v1461_v34 = vld [vmem:[%s1853_s0 + $0xa0] sm:$0xff]  }
  0x21   :  { %v1462_v35 = vld [vmem:[%s1853_s0 + $0xa8] sm:$0xff]   ;;  %v1465_v36 = vld [vmem:[%s1853_s0 + $0xb0] sm:$0xff]   ;;  %v1466_v37 = vld [vmem:[%s1853_s0 + $0xb8] sm:$0xff]  }
  0x22   :  { %1273 = vmatmul.mubr.msk.bf16.gmra.mrb[12].mxu0 %vm277_vm2, %v1442_v18  ;;  %v735_v38 = vld [vmem:[%s1856_s3 + $0x8] sm:$0xff]  ;;  %v1683_v39 = vld [vmem:[%s1855_s2] ss:$0 sm:$0xff] }
  0x23   :  { %1276 = vmatprep.mubr.msk.bf16.mxu0 %vm277_vm2, %v1443_v19 }
  0x24   :  { %1321 = vmatmul.mubr.msk.bf16.gmra.mrb[12].mxu1 %vm277_vm2, %v1464_v24 }
  0x25   :  { %802 = vmatprep.mubr.f32.mxu1 %v735_v38 }
  0x2a   :  { %1277 = vmatmul.mubr.msk.bf16.gmra.mrb[16].mxu0 %vm277_vm2, %v1444_v22 }
  0x2b   :  { %1280 = vmatprep.mubr.msk.bf16.mxu0 %vm277_vm2, %v1445_v23 }
  0x32   :  { %1281 = vmatmul.mubr.msk.bf16.gmra.mrb[20].mxu0 %vm277_vm2, %v1446_v25 }
  0x33   :  { %1284 = vmatprep.mubr.msk.bf16.mxu0 %vm277_vm2, %v1447_v26 }
  0x3a   :  { %1285 = vmatmul.mubr.msk.bf16.gmra.mrb[24].mxu0 %vm277_vm2, %v1448_v27 }
  0x3b   :  { %1288 = vmatprep.mubr.msk.bf16.mxu0 %vm277_vm2, %v1449_v28 }
  0x42   :  { %1289 = vmatmul.mubr.msk.bf16.gmra.mrb[28].mxu0 %vm277_vm2, %v1450_v29 }
  0x43   :  { %1292 = vmatprep.mubr.msk.bf16.mxu0 %vm277_vm2, %v1453_v30 }
  0x4a   :  { %1293 = vmatmul.mubr.msk.bf16.gmra.mrb[32].mxu0 %vm277_vm2, %v1454_v31 }
  0x4b   :  { %1296 = vmatprep.mubr.msk.bf16.mxu0 %vm277_vm2, %v1457_v32 }
  0x52   :  { %1297 = vmatmul.mubr.msk.bf16.gmra.mrb[36].mxu0 %vm277_vm2, %v1458_v33 }
  0x53   :  { %1300 = vmatprep.mubr.msk.bf16.mxu0 %vm277_vm2, %v1461_v34 }
  0x5a   :  { %1301 = vmatmul.mubr.msk.bf16.gmra.mrb[40].mxu0 %vm277_vm2, %v1462_v35 }
  0x5b   :  { %1304 = vmatprep.mubr.msk.bf16.mxu0 %vm277_vm2, %v1465_v36 }
  0x62   :  { %1305 = vmatmul.mubr.msk.bf16.gmra.mrb[44].mxu0 %vm277_vm2, %v1466_v37 }
  0xdd   :  { %v1262_v40 = vpop.f32.mrb[0].mxu0  ;;  %v1310_v61 = vpop.f32.mrb[0].mxu1 }
  0xde   :  { %v424_v41 = vadd.f32 %v1262_v40, %v1683_v39  ;;  %v415_v42 = vpop.f32.mrb[1].mxu0  ;;  %v616_v63 = vadd.f32 %v1310_v61, %v1683_v39  ;;  %v607_v0 = vpop.f32.mrb[1].mxu1 }
  0xdf   :  { %v416_v43 = vadd.f32 %v1683_v39, %v415_v42  ;;  %v1263_v44 = vpop.f32.mrb[2].mxu0  ;;  %v608_v3 = vadd.f32 %v1683_v39, %v607_v0  ;;  %v1311_v4 = vpop.f32.mrb[2].mxu1 }
  0xe0   :  { %v427_v45 = vadd.f32 %v1263_v44, %v1683_v39  ;;  %v418_v46 = vpop.f32.mrb[3].mxu0  ;;  %v672_v48 = vmax.f32 %v424_v41, 0.0  ;;  %v720_v7 = vmax.f32 %v616_v63, 0.0  ;;  %v619_v8 = vadd.f32 %v1311_v4, %v1683_v39  ;;  %v610_v9 = vpop.f32.mrb[3].mxu1 }
  0xe1   :  { %v419_v47 = vadd.f32 %v1683_v39, %v418_v46  ;;  %v670_v50 = vmax.f32 %v416_v43, 0.0  ;;  %v718_v11 = vmax.f32 %v608_v3, 0.0  ;;  %v611_v12 = vadd.f32 %v1683_v39, %v610_v9 }
  0xe2   :  { %v673_v49 = vmax.f32 %v427_v45, 0.0  ;;  %v721_v15 = vmax.f32 %v619_v8, 0.0 }
  0xe3   :  { %v671_v51 = vmax.f32 %v419_v47, 0.0  ;;  %v719_v18 = vmax.f32 %v611_v12, 0.0 }
  0xe4   :  { %v1689_v52 = vpack.c.bf16 %v673_v49, %v672_v48  ;;  %v1707_v21 = vpack.c.bf16 %v721_v15, %v720_v7 }
  0xe5   :  { %v1691_v53 = vpack.c.bf16 %v671_v51, %v670_v50  ;;  %v1266_v54 = vpop.f32.mrb[4].mxu0  ;;  %v1710_v24 = vpack.c.bf16 %v719_v18, %v718_v11  ;;  %v1314_v25 = vpop.f32.mrb[4].mxu1 }
  0xe6   :  { %v440_v55 = vadd.f32 %v1266_v54, %v1683_v39  ;;  %v431_v56 = vpop.f32.mrb[5].mxu0  ;;  %v632_v27 = vadd.f32 %v1314_v25, %v1683_v39  ;;  %v623_v28 = vpop.f32.mrb[5].mxu1 }
  0xe7   :  { %v432_v57 = vadd.f32 %v1683_v39, %v431_v56  ;;  %v1267_v58 = vpop.f32.mrb[6].mxu0  ;;  %v624_v31 = vadd.f32 %v1683_v39, %v623_v28  ;;  %v1315_v32 = vpop.f32.mrb[6].mxu1 }
  0xe8   :  { %v443_v59 = vadd.f32 %v1267_v58, %v1683_v39  ;;  %v434_v60 = vpop.f32.mrb[7].mxu0  ;;  %v676_v1 = vmax.f32 %v440_v55, 0.0  ;;  %v724_v35 = vmax.f32 %v632_v27, 0.0  ;;  %v635_v36 = vadd.f32 %v1315_v32, %v1683_v39  ;;  %v626_v37 = vpop.f32.mrb[7].mxu1 }
  0xe9   :  { %v435_v62 = vadd.f32 %v1683_v39, %v434_v60  ;;  %v674_v5 = vmax.f32 %v432_v57, 0.0  ;;  %v722_v40 = vmax.f32 %v624_v31, 0.0  ;;  %v627_v41 = vadd.f32 %v1683_v39, %v626_v37 }
  0xea   :  { %v677_v2 = vmax.f32 %v443_v59, 0.0  ;;  %v725_v44 = vmax.f32 %v635_v36, 0.0 }
  0xeb   :  { %v675_v6 = vmax.f32 %v435_v62, 0.0  ;;  %v723_v47 = vmax.f32 %v627_v41, 0.0 }
  0xec   :  { %v1700_v10 = vpack.c.bf16 %v677_v2, %v676_v1  ;;  %v1723_v50 = vpack.c.bf16 %v725_v44, %v724_v35 }
  0xed   :  { %v1703_v13 = vpack.c.bf16 %v675_v6, %v674_v5  ;;  %v1270_v14 = vpop.f32.mrb[8].mxu0  ;;  %v1726_v55 = vpack.c.bf16 %v723_v47, %v722_v40 }
  0xee   :  { %v456_v16 = vadd.f32 %v1270_v14, %v1683_v39  ;;  %v447_v17 = vpop.f32.mrb[9].mxu0 }
  0xef   :  { %v448_v19 = vadd.f32 %v1683_v39, %v447_v17  ;;  %v1271_v20 = vpop.f32.mrb[10].mxu0  ;;  %v1318_v56 = vpop.f32.mrb[8].mxu1 }
  0xf0   :  { %v459_v22 = vadd.f32 %v1271_v20, %v1683_v39  ;;  %v450_v23 = vpop.f32.mrb[11].mxu0  ;;  %v680_v29 = vmax.f32 %v456_v16, 0.0  ;;  %v648_v58 = vadd.f32 %v1318_v56, %v1683_v39  ;;  %v639_v59 = vpop.f32.mrb[9].mxu1 }
  0xf1   :  { %v451_v26 = vadd.f32 %v1683_v39, %v450_v23  ;;  %v678_v33 = vmax.f32 %v448_v19, 0.0  ;;  %v640_v62 = vadd.f32 %v1683_v39, %v639_v59  ;;  %v1319_v63 = vpop.f32.mrb[10].mxu1 }
  0xf2   :  { %v681_v30 = vmax.f32 %v459_v22, 0.0  ;;  %v728_v2 = vmax.f32 %v648_v58, 0.0  ;;  %v651_v3 = vadd.f32 %v1319_v63, %v1683_v39  ;;  %v642_v4 = vpop.f32.mrb[11].mxu1 }
  0xf3   :  { %v679_v34 = vmax.f32 %v451_v26, 0.0  ;;  %v726_v6 = vmax.f32 %v640_v62, 0.0  ;;  %v643_v7 = vadd.f32 %v1683_v39, %v642_v4 }
  0xf4   :  { %v1716_v38 = vpack.c.bf16 %v681_v30, %v680_v29  ;;  %v729_v11 = vmax.f32 %v651_v3, 0.0 }
  0xf5   :  { %v1719_v42 = vpack.c.bf16 %v679_v34, %v678_v33  ;;  %v1274_v43 = vpop.f32.mrb[12].mxu0  ;;  %v727_v15 = vmax.f32 %v643_v7, 0.0 }
  0xf6   :  { %v472_v45 = vadd.f32 %v1274_v43, %v1683_v39  ;;  %v463_v46 = vpop.f32.mrb[13].mxu0  ;;  %v1739_v18 = vpack.c.bf16 %v729_v11, %v728_v2 }
  0xf7   :  { %v464_v48 = vadd.f32 %v1683_v39, %v463_v46  ;;  %v1275_v49 = vpop.f32.mrb[14].mxu0  ;;  %v1742_v22 = vpack.c.bf16 %v727_v15, %v726_v6  ;;  %v1322_v23 = vpop.f32.mrb[12].mxu1 }
  0xf8   :  { %v475_v51 = vadd.f32 %v1275_v49, %v1683_v39  ;;  %v466_v54 = vpop.f32.mrb[15].mxu0  ;;  %v684_v60 = vmax.f32 %v472_v45, 0.0  ;;  %v664_v26 = vadd.f32 %v1322_v23, %v1683_v39  ;;  %v655_v27 = vpop.f32.mrb[13].mxu1 }
  0xf9   :  { %v467_v57 = vadd.f32 %v1683_v39, %v466_v54  ;;  %v682_v0 = vmax.f32 %v464_v48, 0.0  ;;  %v656_v30 = vadd.f32 %v1683_v39, %v655_v27  ;;  %v1323_v31 = vpop.f32.mrb[14].mxu1 }
  0xfa   :  { %v685_v61 = vmax.f32 %v475_v51, 0.0  ;;  %v732_v34 = vmax.f32 %v664_v26, 0.0  ;;  %v667_v35 = vadd.f32 %v1323_v31, %v1683_v39  ;;  %v658_v36 = vpop.f32.mrb[15].mxu1 }
  0xfb   :  { %v683_v1 = vmax.f32 %v467_v57, 0.0  ;;  %v730_v40 = vmax.f32 %v656_v30, 0.0  ;;  %v659_v41 = vadd.f32 %v1683_v39, %v658_v36 }
  0xfc   :  { %v1732_v5 = vpack.c.bf16 %v685_v61, %v684_v60  ;;  %v733_v45 = vmax.f32 %v667_v35, 0.0 }
  0xfd   :  { %v1735_v8 = vpack.c.bf16 %v683_v1, %v682_v0  ;;  %v1278_v9 = vpop.f32.mrb[16].mxu0  ;;  %v731_v48 = vmax.f32 %v659_v41, 0.0 }
  0xfe   :  { %v488_v12 = vadd.f32 %v1278_v9, %v1683_v39  ;;  %v479_v14 = vpop.f32.mrb[17].mxu0  ;;  %v1751_v54 = vpack.c.bf16 %v733_v45, %v732_v34 }
  0xff   :  { %v480_v16 = vadd.f32 %v1683_v39, %v479_v14  ;;  %v1279_v17 = vpop.f32.mrb[18].mxu0  ;;  %v1755_v58 = vpack.c.bf16 %v731_v48, %v730_v40  ;;  %v734_v48 = vld [vmem:[%s1856_s3] sm:$0xff] }
 0x100   :  { %v491_v19 = vadd.f32 %v1279_v17, %v1683_v39  ;;  %v482_v20 = vpop.f32.mrb[19].mxu0  ;;  %v688_v28 = vmax.f32 %v488_v12, 0.0 }
 0x101   :  { %v483_v25 = vadd.f32 %v1683_v39, %v482_v20  ;;  %v686_v32 = vmax.f32 %v480_v16, 0.0 }
 0x102   :  { %v689_v29 = vmax.f32 %v491_v19, 0.0 }
 0x103   :  { %v687_v33 = vmax.f32 %v483_v25, 0.0 }
 0x104   :  { %v1352_v37 = vpack.c.bf16 %v689_v29, %v688_v28 }
 0x105   :  { %v1348_v43 = vpack.c.bf16 %v687_v33, %v686_v32  ;;  %v1282_v44 = vpop.f32.mrb[20].mxu0 }
 0x106   :  { %v504_v46 = vadd.f32 %v1282_v44, %v1683_v39  ;;  %v495_v47 = vpop.f32.mrb[21].mxu0 }
 0x107   :  { %v496_v49 = vadd.f32 %v1683_v39, %v495_v47  ;;  %v1283_v51 = vpop.f32.mrb[22].mxu0  ;;  %1349 = vmatprep.subr.bf16.mxu1 %v1348_v43 }
 0x108   :  { %v507_v56 = vadd.f32 %v1283_v51, %v1683_v39  ;;  %v498_v57 = vpop.f32.mrb[23].mxu0  ;;  %1351 = vmatpush3.bf16.msra.mxu1 %v1691_v53  ;;  %v692_v60 = vmax.f32 %v504_v46, 0.0 }
 0x109   :  { %v499_v59 = vadd.f32 %v1683_v39, %v498_v57  ;;  %1353 = vmatprep.subr.bf16.mxu1 %v1352_v37  ;;  %v690_v62 = vmax.f32 %v496_v49, 0.0 }
 0x10a   :  { %v693_v61 = vmax.f32 %v507_v56, 0.0 }
 0x10b   :  { %v691_v63 = vmax.f32 %v499_v59, 0.0 }
 0x10c   :  { %v1360_v0 = vpack.c.bf16 %v693_v61, %v692_v60  ;;  %1355 = vmatpush3.bf16.msra.mxu1 %v1689_v52 }
 0x10d   :  { %v1356_v1 = vpack.c.bf16 %v691_v63, %v690_v62  ;;  %v1286_v2 = vpop.f32.mrb[24].mxu0 }
 0x10e   :  { %v520_v3 = vadd.f32 %v1286_v2, %v1683_v39  ;;  %v511_v4 = vpop.f32.mrb[25].mxu0 }
 0x10f   :  { %v512_v6 = vadd.f32 %v1683_v39, %v511_v4  ;;  %v1287_v53 = vpop.f32.mrb[26].mxu0  ;;  %1357 = vmatprep.subr.bf16.mxu1 %v1356_v1 }
 0x110   :  { %v523_v7 = vadd.f32 %v1287_v53, %v1683_v39  ;;  %v514_v9 = vpop.f32.mrb[27].mxu0  ;;  %1359 = vmatpush3.bf16.msra.mxu1 %v1703_v13  ;;  %v696_v12 = vmax.f32 %v520_v3, 0.0 }
 0x111   :  { %v515_v11 = vadd.f32 %v1683_v39, %v514_v9  ;;  %1361 = vmatprep.subr.bf16.mxu1 %v1360_v0  ;;  %v694_v52 = vmax.f32 %v512_v6, 0.0 }
 0x112   :  { %v697_v14 = vmax.f32 %v523_v7, 0.0 }
 0x113   :  { %v695_v15 = vmax.f32 %v515_v11, 0.0 }
 0x114   :  { %v1368_v16 = vpack.c.bf16 %v697_v14, %v696_v12  ;;  %1363 = vmatpush3.bf16.msra.mxu1 %v1700_v10 }
 0x115   :  { %v1364_v17 = vpack.c.bf16 %v695_v15, %v694_v52  ;;  %v1290_v19 = vpop.f32.mrb[28].mxu0 }
 0x116   :  { %v536_v20 = vadd.f32 %v1290_v19, %v1683_v39  ;;  %v527_v23 = vpop.f32.mrb[29].mxu0 }
 0x117   :  { %v528_v25 = vadd.f32 %v1683_v39, %v527_v23  ;;  %v1291_v26 = vpop.f32.mrb[30].mxu0  ;;  %1365 = vmatprep.subr.bf16.mxu1 %v1364_v17 }
 0x118   :  { %v539_v13 = vadd.f32 %v1291_v26, %v1683_v39  ;;  %v530_v27 = vpop.f32.mrb[31].mxu0  ;;  %1367 = vmatpush3.bf16.msra.mxu1 %v1719_v42  ;;  %v700_v29 = vmax.f32 %v536_v20, 0.0 }
 0x119   :  { %v531_v28 = vadd.f32 %v1683_v39, %v530_v27  ;;  %1369 = vmatprep.subr.bf16.mxu1 %v1368_v16  ;;  %v698_v10 = vmax.f32 %v528_v25, 0.0 }
 0x11a   :  { %v701_v30 = vmax.f32 %v539_v13, 0.0 }
 0x11b   :  { %v699_v31 = vmax.f32 %v531_v28, 0.0 }
 0x11c   :  { %v1376_v32 = vpack.c.bf16 %v701_v30, %v700_v29  ;;  %1371 = vmatpush3.bf16.msra.mxu1 %v1716_v38 }
 0x11d   :  { %v1372_v33 = vpack.c.bf16 %v699_v31, %v698_v10  ;;  %v1294_v34 = vpop.f32.mrb[32].mxu0 }
 0x11e   :  { %v552_v35 = vadd.f32 %v1294_v34, %v1683_v39  ;;  %v543_v36 = vpop.f32.mrb[33].mxu0 }
 0x11f   :  { %v544_v37 = vadd.f32 %v1683_v39, %v543_v36  ;;  %v1295_v40 = vpop.f32.mrb[34].mxu0  ;;  %1373 = vmatprep.subr.bf16.mxu1 %v1372_v33  ;;  %v960_v36 = vld [vmem:[%s1859_s6] sm:$0xff] }
 0x120   :  { %v704_v42 = vmax.f32 %v552_v35, 0.0  ;;  %v555_v41 = vadd.f32 %v1295_v40, %v1683_v39  ;;  %v546_v43 = vpop.f32.mrb[35].mxu0  ;;  %1375 = vmatpush3.bf16.msra.mxu1 %v1735_v8  ;;  %v737_v8 = vld [vmem:[%s1856_s3 + $0x18] sm:$0xff] }
 0x121   :  { %v547_v44 = vadd.f32 %v1683_v39, %v546_v43  ;;  %1377 = vmatprep.subr.bf16.mxu1 %v1376_v32  ;;  %v702_v38 = vmax.f32 %v544_v37, 0.0  ;;  %v736_v32 = vld [vmem:[%s1856_s3 + $0x10] sm:$0xff]  ;;  %v961_v37 = vld [vmem:[%s1859_s6 + $0x8] sm:$0xff] }
 0x122   :  { %v705_v45 = vmax.f32 %v555_v41, 0.0  ;;  %v1413_v41 = vpack.c.bf16 %v961_v37, %v960_v36 }
 0x123   :  { %v703_v46 = vmax.f32 %v547_v44, 0.0  ;;  %v962_v44 = vld [vmem:[%s1859_s6 + $0x10] sm:$0xff] }
 0x124   :  { %v1386_v47 = vpack.c.bf16 %v705_v45, %v704_v42  ;;  %1379 = vmatpush3.bf16.msra.mxu1 %v1732_v5  ;;  %v963_v45 = vld [vmem:[%s1859_s6 + $0x18] sm:$0xff] }
 0x125   :  { %v1382_v49 = vpack.c.bf16 %v703_v46, %v702_v38  ;;  %v1298_v51 = vpop.f32.mrb[36].mxu0  ;;  %1381 = vmatprep.subr.bf16.mxu1 %v1710_v24  ;;  %v1416_v38 = vpack.c.bf16 %v963_v45, %v962_v44  ;;  %v964_v46 = vld [vmem:[%s1859_s6 + $0x20] sm:$0xff] }
 0x126   :  { %v568_v56 = vadd.f32 %v1298_v51, %v1683_v39  ;;  %v559_v57 = vpop.f32.mrb[37].mxu0  ;;  %v967_v51 = vld [vmem:[%s1859_s6 + $0x38] sm:$0xff] }
 0x127   :  { %v560_v59 = vadd.f32 %v1683_v39, %v559_v57  ;;  %v1299_v60 = vpop.f32.mrb[38].mxu0  ;;  %803 = vmatmul.mubr.f32.vlgmr.msra.gmra.mrb[16].mxu1 %v734_v48 }
 0x128   :  { %v708_v5 = vmax.f32 %v568_v56, 0.0  ;;  %v571_v61 = vadd.f32 %v1299_v60, %v1683_v39  ;;  %v562_v62 = vpop.f32.mrb[39].mxu0  ;;  %1383 = vmatpush3.bf16.msra.mxu1 %v1382_v49  ;;  %872 = vmatprep.mubr.f32.mxu1 %v737_v8  ;;  %v966_v49 = vld [vmem:[%s1859_s6 + $0x30] sm:$0xff]  ;;  %v1137_v56 = vld [vmem:[%s1858_s5] ss:$0 sm:$0xff] }
 0x129   :  { %v563_v63 = vadd.f32 %v1683_v39, %v562_v62  ;;  %1385 = vmatprep.subr.bf16.mxu1 %v1707_v21  ;;  %v706_v0 = vmax.f32 %v560_v59, 0.0  ;;  %v1422_v8 = vpack.c.bf16 %v967_v51, %v966_v49 }
 0x12a   :  { %v709_v24 = vmax.f32 %v571_v61, 0.0 }
 0x12b   :  { %v707_v1 = vmax.f32 %v563_v63, 0.0 }
 0x12c   :  { %v1394_v2 = vpack.c.bf16 %v709_v24, %v708_v5  ;;  %1387 = vmatpush3.bf16.msra.mxu1 %v1386_v47  ;;  %v965_v47 = vld [vmem:[%s1859_s6 + $0x28] sm:$0xff]  ;;  %v1139_v5 = vld [vmem:[%s1860_s7] ss:$0 sm:$0xff]  ;;  %s1497_s6 = smov [#allocation2]  }
 0x12d   :  { %v1390_v3 = vpack.c.bf16 %v707_v1, %v706_v0  ;;  %v1302_v4 = vpop.f32.mrb[40].mxu0  ;;  %1389 = vmatprep.subr.bf16.mxu1 %v1726_v55  ;;  %v1419_v48 = vpack.c.bf16 %v965_v47, %v964_v46  ;;  %s1062_s2 = sshll.u32 %s1497_s6, 4  ;;  %s1063_s2 = int_to_ptr.vmem [resolvable:$true] %s1062_s2 }
 0x12e   :  { %v584_v6 = vadd.f32 %v1302_v4, %v1683_v39  ;;  %v575_v53 = vpop.f32.mrb[41].mxu0  ;;  %s1469_s5 = scalar_lea.vmem %s1063_s2, 128  ;;  %p1474_p1 = scmp.lt.s32.totalorder %s1063_s2, %s1063_s2 }
 0x12f   :  { %v576_v7 = vadd.f32 %v1683_v39, %v575_v53  ;;  %v1303_v9 = vpop.f32.mrb[42].mxu0  ;;  %p1470_p0 = scmp.ne.s32.totalorder %s1063_s2, %s1469_s5  ;;  %p1475_p2 = scmp.lt.s32.totalorder %s1469_s5, %s1469_s5 }
 0x130   :  { %v712_v11 = vmax.f32 %v584_v6, 0.0  ;;  %v587_v12 = vadd.f32 %v1303_v9, %v1683_v39  ;;  %v578_v14 = vpop.f32.mrb[43].mxu0  ;;  %1391 = vmatpush3.bf16.msra.mxu1 %v1390_v3 }
 0x131   :  { %v579_v21 = vadd.f32 %v1683_v39, %v578_v14  ;;  %1393 = vmatprep.subr.bf16.mxu1 %v1723_v50  ;;  %v710_v15 = vmax.f32 %v576_v7, 0.0  ;;  %p1476_p3 = por %p1475_p2, %p1474_p1 }
 0x132   :  { %v713_v52 = vmax.f32 %v587_v12, 0.0 }
 0x133   :  { %v711_v16 = vmax.f32 %v579_v21, 0.0  ;;  %p1477_p4 = pnand %p1476_p3, %p1470_p0 }
 0x134   :  { %v1402_v17 = vpack.c.bf16 %v713_v52, %v712_v11  ;;  %1395 = vmatpush3.bf16.msra.mxu1 %v1394_v2 }
 0x135   :  { %v1398_v55 = vpack.c.bf16 %v711_v16, %v710_v15  ;;  %v1306_v19 = vpop.f32.mrb[44].mxu0  ;;  %1397 = vmatprep.subr.bf16.mxu1 %v1742_v22 }
 0x136   :  { %v600_v20 = vadd.f32 %v1306_v19, %v1683_v39  ;;  %v591_v23 = vpop.f32.mrb[45].mxu0 }
 0x137   :  { %v592_v25 = vadd.f32 %v1683_v39, %v591_v23  ;;  %v1307_v26 = vpop.f32.mrb[46].mxu0 }
 0x138   :  { %v716_v13 = vmax.f32 %v600_v20, 0.0  ;;  %v603_v27 = vadd.f32 %v1307_v26, %v1683_v39  ;;  %v594_v28 = vpop.f32.mrb[47].mxu0  ;;  %1399 = vmatpush3.bf16.msra.mxu1 %v1398_v55 }
 0x139   :  { %v595_v50 = vadd.f32 %v1683_v39, %v594_v28  ;;  %1401 = vmatprep.subr.bf16.mxu1 %v1739_v18  ;;  %v714_v30 = vmax.f32 %v592_v25, 0.0  ;;  %v1494_v39 = vmov 0.0   ;;  %v878_v18 = vld [vmem:[%s1857_s4] sm:$0xff] }
 0x13a   :  { %v717_v29 = vmax.f32 %v603_v27, 0.0 }
 0x13b   :  { %v715_v10 = vmax.f32 %v595_v50, 0.0 }
 0x13c   :  { %v1410_v31 = vpack.c.bf16 %v717_v29, %v716_v13  ;;  %1403 = vmatpush3.bf16.msra.mxu1 %v1402_v17 }
 0x13d   :  { %v1406_v22 = vpack.c.bf16 %v715_v10, %v714_v30  ;;  %1405 = vmatprep.subr.bf16.mxu1 %v1755_v58  ;;  %v1496_v58 = vmov 0.0|0.0  }
 0x140   :  { %1407 = vmatpush3.bf16.msra.mxu1 %v1406_v22 }
 0x141   :  { %1409 = vmatprep.subr.bf16.mxu1 %v1751_v54 }
 0x144   :  { %1411 = vmatpush3.bf16.msra.mxu1 %v1410_v31 }
 0x145   :  { %1324 = vmatprep.subr.mxu1 %v1494_v39 }
 0x147   :  { %873 = vmatmul.mubr.f32.vlgmr.msra.gmra.mrb[18].mxu1 %v736_v32 }
 0x148   :  { %1325 = vmatpush3.msra.mxu1 %v878_v18  ;;  %1326 = vmatprep.mubr.msk.f32.mxu1 %vm1495_vm3, %v1494_v39 }
 0x149   :  { %1412 = vmatprep.subr.bf16.mxu1 %v1496_v58 }
 0x1fa   :  { %v1207_v33 = vpop.f32.mrb[16].mxu1 }
 0x1fb   :  { %v1208_v54 = vpop.f32.mrb[17].mxu1 }
 0x1fc   :  { %v1209_v34 = vadd.f32 %v1208_v54, %v1207_v33 }
 0x21a   :  { %v1242_v35 = vpop.f32.mrb[18].mxu1 }
 0x21b   :  { %v1243_v40 = vpop.f32.mrb[19].mxu1 }
 0x21c   :  { %v1244_v42 = vadd.f32 %v1243_v40, %v1242_v35 }
 0x21e   :  { %v875_v43 = vadd.f32 %v1244_v42, %v1209_v34 }
 0x220   :  { %1327 = vmatmul.mubr.msk.f32.vlgmr.msra.gmra.mrb[20].mxu1 %vm886_vm4, %v875_v43 }
 0x221   :  { %1414 = vmatpush3.bf16.msra.mxu1 %v1413_v41  ;;  %1345 = vmatprep.mubr.msk.f32.mxu1 %vm1495_vm3, %v1494_v39 }
 0x222   :  { %1415 = vmatprep.subr.bf16.mxu1 %v1496_v58 }
 0x225   :  { %1417 = vmatpush3.bf16.msra.mxu1 %v1416_v38 }
 0x226   :  { %1418 = vmatprep.subr.bf16.mxu1 %v1496_v58 }
 0x229   :  { %1420 = vmatpush3.bf16.msra.mxu1 %v1419_v48 }
 0x22a   :  { %1421 = vmatprep.subr.bf16.mxu1 %v1496_v58 }
 0x22d   :  { %1423 = vmatpush3.bf16.msra.mxu1 %v1422_v8 }
 0x2f3   :  { %v956_v57 = vpop.f32.mrb[20].mxu1 }
 0x2f4   :  { %v957_v59 = vadd.f32 %v1137_v56, %v956_v57  ;;  %v1328_v60 = vpop.f32.mrb[21].mxu1 }
 0x2f6   :  { %1346 = vmatmul.mubr.msk.f32.vlgmr.msra.gmra.mrb[22].mxu1 %vm975_vm5, %v957_v59 }
 0x3c9   :  { %v1045_v61 = vpop.f32.mrb[22].mxu1 }
 0x3ca   :  { %v1046_v62 = vadd.f32 %v1139_v5, %v1045_v61  ;;  %v1347_v63 = vpop.f32.mrb[23].mxu1 }
 0x3cc   :  { %v1049_v24 = vmul.f32 %v1046_v62, %v1046_v62 }
 0x3ce   :  { %1050 = vadd.xlane.f32.xlu0 %v1049_v24 }
 0x45b   :  { %v1051_v0 = vpop.xlane.xlu0 %1050 }
 0x45c   :  { %v1052_v1 = vmax.f32 %v1051_v0, 1e-24 }
 0x45e   :  { %1467 = vrsqrt.f32 %v1052_v1 }
 0x468   :  { %v1468_v2 = vpop.eup %1467 }
 0x469   :  { %v1054_v3 = vmul.f32 %v1468_v2, %v1046_v62 }
 0x46b   :  { %1055 = vst [vmem:[#allocation2] sm:$0xff] %v1054_v3 }
 0x46c   :  { %1480 = shalt.err (!%p1477_p4)
}
 0x46d   :  { %s1481_s9 = scalar_lea.hbm %s1861_s8, 128 }
 0x46e   :  { %p1482_p5 = scmp.ne.s32.totalorder %s1861_s8, %s1481_s9  ;;  %p1485_p6 = scmp.lt.u32.totalorder %s1481_s9, %s1861_s8 }
 0x470   :  { %p1487_p7 = pnand %p1485_p6, %p1482_p5 }
 0x472   :  { %1490 = shalt.err (!%p1487_p7)
}
 0x473   :  { %1065 = dma.vmem_to_hbm [thread:$0]  %s1063_s2, 128, %s1861_s8, [#allocation3]  }
 0x474   :  { %1491 = dma.done.wait [#allocation3], 128  }
 0x475   :  { %1492 = vsyncadd [#allocation3], 4294967168 }
 0x476   :  { %1069 = vsyncpa [#allocation3], 1 }

</bundles_post_ra>
